<compile_context>
chip_gen: v7x
topology: tpu7x:2x2x1
jax: 0.10.0
libtpu: 0.0.40
codegen_flags: <defaults>
</compile_context>

<pallas_src>
import functools

import numpy as np
import jax
import jax.numpy as jnp
from jax.experimental import pallas as pl
from jax.experimental.pallas import tpu as pltpu


def _make_tap_mask(H, W):
    """(9, H*W) f32 mask; row t = (dy+1)*3+(dx+1), col h*W+w is 1 iff
    (h+dy, w+dx) lies inside the image."""
    hh, ww = np.meshgrid(np.arange(H), np.arange(W), indexing="ij")
    rows = []
    for dy in (-1, 0, 1):
        for dx in (-1, 0, 1):
            valid = ((hh + dy >= 0) & (hh + dy < H) &
                     (ww + dx >= 0) & (ww + dx < W)).reshape(-1)
            rows.append(valid)
    return jnp.asarray(np.stack(rows, axis=0).astype(np.float32))


def _images_per_step(n, hw, max_lanes=4096):
    """How many images to fold into one lane block per grid step."""
    if hw % 128 != 0:
        # Lane block must be 128-divisible or full-extent; fall back to one
        # full-extent block when H*W is not lane-aligned.
        return n
    nb = max(1, min(n, max(1, max_lanes // hw)))
    while n % nb:
        nb -= 1
    if n >= 2 and n // nb < 2:      # keep >= 2 parallel steps (v7x has 2 TCs)
        nb = max(1, n // 2)
        while n % nb:
            nb -= 1
    return nb


def fire_kernel(x_ref, wsq_ref, bsq_ref, wex_ref, bex_ref, mask_ref, out_ref,
                *, img_w, dot_dtype):
    # Every operand is (C, L): channels on sublanes, flat (image*spatial)
    # lanes on the 128-lane axis -> lane-dense vregs, MXU N-dim and stores.
    lanes = x_ref.shape[-1]

    # --- squeeze: 1x1 conv == (Csq, Cin) @ (Cin, L), then bias + ReLU -------
    s = jnp.dot(wsq_ref[...], x_ref[...].astype(dot_dtype),
                preferred_element_type=jnp.float32)
    s = jnp.maximum(s + bsq_ref[...], 0.0)                      # (Csq, L) f32

    # --- im2col of the squeezed activation --------------------------------
    # Tap (dy, dx) needs s[:, p + dy*W + dx]: a lane roll (XLU slot, off the
    # VPU/store path), zeroed at image borders by the per-tap (1, L) mask row
    # (which also kills the roll's wrap-around lanes, including wraps across
    # image boundaries in the lane-flattened layout).  Center tap is always
    # valid and skips the multiply.
    mask = mask_ref[...]                                        # (9, L) f32
    taps = []
    t = 0
    for dy in (-1, 0, 1):
        for dx in (-1, 0, 1):
            d = dy * img_w + dx
            if d == 0:
                r = s
            else:
                r = pltpu.roll(s, shift=(-d) % lanes, axis=1) * mask[t:t + 1, :]
            taps.append(r)
            t += 1
    sbig = jnp.concatenate(taps, axis=0).astype(dot_dtype)      # (9*Csq, L)

    # --- fused expand (1x1 + 3x3): one matmul, one bias+ReLU, one store ----
    e = jnp.dot(wex_ref[...], sbig, preferred_element_type=jnp.float32)
    out_ref[...] = jnp.maximum(e + bex_ref[...], 0.0).astype(out_ref.dtype)


def fire_forward(x_nchw, params, *, compute_dtype=jnp.float32,
                 max_lanes_per_step=4096):
    """Fire forward. x_nchw: (N, Cin, H, W) f32 -> (N, Ce1+Ce3, H, W) f32."""
    wsq, bsq, we1, be1, we3, be3 = params
    N, Cin, H, W = x_nchw.shape
    Csq = wsq.shape[1]
    Ce1 = we1.shape[1]
    Ce3 = we3.shape[3]
    Cout = Ce1 + Ce3
    HW = H * W

    nb = _images_per_step(N, HW, max_lanes_per_step)
    Lb = nb * HW                    # lanes per grid step
    n_blocks = N // nb

    # Lane-flattened view: (Cin, N*HW).  One cheap XLA transpose in/out of the
    # kernel; everything inside stays (C, lanes).
    x_t = jnp.transpose(x_nchw, (1, 0, 2, 3)).reshape(Cin, N * HW)

    # One-time weight prep (XLA, outside the kernel).
    wsq_t = wsq.T.astype(compute_dtype)                         # (Csq, Cin)
    bsq_t = bsq.reshape(Csq, 1)                                 # f32
    # Fused expand weight: rows [0, Ce1) carry the 1x1 weights in the
    # center-tap (t=4) columns only; rows [Ce1, Cout) carry the 3x3 weights
    # with tap-major columns matching sbig's row order.
    we1_rows = jnp.zeros((Ce1, 9 * Csq), jnp.float32)
    we1_rows = we1_rows.at[:, 4 * Csq:5 * Csq].set(we1.T)
    we3_rows = jnp.transpose(we3, (3, 0, 1, 2)).reshape(Ce3, 9 * Csq)
    wex = jnp.concatenate([we1_rows, we3_rows], axis=0).astype(compute_dtype)
    bex = jnp.concatenate([be1.reshape(Ce1, 1), be3.reshape(Ce3, 1)], axis=0)

    # Per-tap border mask, tiled to one lane block (blocks start at image
    # boundaries, so a single constant-indexed (9, Lb) tile serves all steps).
    mask = jnp.tile(_make_tap_mask(H, W), (1, nb))              # (9, Lb)

    kernel = functools.partial(fire_kernel, img_w=W, dot_dtype=compute_dtype)

    out = pl.pallas_call(
        kernel,
        out_shape=jax.ShapeDtypeStruct((Cout, N * HW), jnp.float32),
        grid_spec=pltpu.PrefetchScalarGridSpec(
            num_scalar_prefetch=0,
            grid=(n_blocks,),
            in_specs=[
                pl.BlockSpec((Cin, Lb), lambda j: (0, j)),
                pl.BlockSpec((Csq, Cin), lambda j: (0, 0)),
                pl.BlockSpec((Csq, 1), lambda j: (0, 0)),
                pl.BlockSpec((Cout, 9 * Csq), lambda j: (0, 0)),
                pl.BlockSpec((Cout, 1), lambda j: (0, 0)),
                pl.BlockSpec((9, Lb), lambda j: (0, 0)),
            ],
            out_specs=pl.BlockSpec((Cout, Lb), lambda j: (0, j)),
        ),
        compiler_params=pltpu.CompilerParams(
            dimension_semantics=("parallel",),
            vmem_limit_bytes=32 * 1024 * 1024),
    )(x_t, wsq_t, bsq_t, wex, bex, mask)

    # (Cout, N*HW) -> (N, Cout, H, W)
    return jnp.transpose(out.reshape(Cout, N, HW), (1, 0, 2)).reshape(
        N, Cout, H, W)


def fire_reference(x_nchw, params):
    """Pure-JAX reference with identical semantics (for verification)."""
    wsq, bsq, we1, be1, we3, be3 = params
    x = jnp.transpose(x_nchw, (0, 2, 3, 1))                      # NHWC
    s = jnp.maximum(jnp.einsum('nhwc,cd->nhwd', x, wsq) + bsq[0], 0.0)
    e1 = jnp.maximum(jnp.einsum('nhwc,cd->nhwd', s, we1) + be1[0], 0.0)
    spad = jnp.pad(s, ((0, 0), (1, 1), (1, 1), (0, 0)))
    H, W = x.shape[1], x.shape[2]
    acc = jnp.zeros(s.shape[:3] + (we3.shape[3],), jnp.float32)
    for ky in range(3):
        for kx in range(3):
            acc = acc + jnp.einsum('nhwc,cd->nhwd',
                                   spad[:, ky:ky + H, kx:kx + W, :], we3[ky, kx])
    e3 = jnp.maximum(acc + be3[0], 0.0)
    return jnp.transpose(jnp.concatenate([e1, e3], axis=-1), (0, 3, 1, 2))


def make_params(key, inplanes, squeeze_planes, expand1x1_planes, expand3x3_planes):
    ks = jax.random.split(key, 6)
    scale = 0.1
    wsq = scale * jax.random.normal(ks[0], (inplanes, squeeze_planes), jnp.float32)
    bsq = scale * jax.random.normal(ks[1], (1, squeeze_planes), jnp.float32)
    we1 = scale * jax.random.normal(ks[2], (squeeze_planes, expand1x1_planes), jnp.float32)
    be1 = scale * jax.random.normal(ks[3], (1, expand1x1_planes), jnp.float32)
    we3 = scale * jax.random.normal(ks[4], (3, 3, squeeze_planes, expand3x3_planes), jnp.float32)
    be3 = scale * jax.random.normal(ks[5], (1, expand3x3_planes), jnp.float32)
    return (wsq, bsq, we1, be1, we3, be3)


if __name__ == "__main__":
    key = jax.random.PRNGKey(0)
    k_x, k_p = jax.random.split(key)

    # Small Fire config: Fire(inplanes=4, squeeze=8, expand1x1=16, expand3x3=16)
    N, Cin, H, W = 2, 4, 16, 16
    Csq, Ce1, Ce3 = 8, 16, 16

    x = jax.random.normal(k_x, (N, Cin, H, W), jnp.float32)
    params = make_params(k_p, Cin, Csq, Ce1, Ce3)

    out = fire_forward(x, params)
    out = jax.block_until_ready(out)

    ref = fire_reference(x, params)
    assert out.shape == (N, Ce1 + Ce3, H, W), out.shape
    assert jnp.allclose(out, ref, atol=1e-4, rtol=1e-4), "mismatch vs reference"

    print("KERNEL_OK")
</pallas_src>

<mosaic_0001>
module attributes {stable_mosaic.version = 11 : i64} {
  func.func @fire_kernel(%arg0: i32, %arg1: memref<4x256xf32, #tpu.memory_space<vmem>>, %arg2: memref<8x4xf32, #tpu.memory_space<vmem>>, %arg3: memref<8x1xf32, #tpu.memory_space<vmem>>, %arg4: memref<32x72xf32, #tpu.memory_space<vmem>>, %arg5: memref<32x1xf32, #tpu.memory_space<vmem>>, %arg6: memref<9x256xf32, #tpu.memory_space<vmem>>, %arg7: memref<32x256xf32, #tpu.memory_space<vmem>>) attributes {dimension_semantics = [#tpu.dimension_semantics<parallel>], iteration_bounds = array<i64: 2>, scalar_prefetch = 0 : i64, scratch_operands = 0 : i64, tpu.core_type = #tpu.core_type<tc>, window_params = [{transform_indices = @transform_0, window_bounds = array<i64: 4, 256>}, {pipeline_mode = #tpu.pipeline_mode<synchronous>, transform_indices = @transform_1, window_bounds = array<i64: 8, 4>}, {pipeline_mode = #tpu.pipeline_mode<synchronous>, transform_indices = @transform_2, window_bounds = array<i64: 8, 1>}, {pipeline_mode = #tpu.pipeline_mode<synchronous>, transform_indices = @transform_3, window_bounds = array<i64: 32, 72>}, {pipeline_mode = #tpu.pipeline_mode<synchronous>, transform_indices = @transform_4, window_bounds = array<i64: 32, 1>}, {pipeline_mode = #tpu.pipeline_mode<synchronous>, transform_indices = @transform_5, window_bounds = array<i64: 9, 256>}, {transform_indices = @transform_6, window_bounds = array<i64: 32, 256>}]} {
    %c0 = arith.constant 0 : index
    %c0_0 = arith.constant 0 : index
    %0 = vector.load %arg2[%c0, %c0_0] : memref<8x4xf32, #tpu.memory_space<vmem>>, vector<8x4xf32>
    %c0_1 = arith.constant 0 : index
    %c0_2 = arith.constant 0 : index
    %1 = vector.load %arg1[%c0_1, %c0_2] : memref<4x256xf32, #tpu.memory_space<vmem>>, vector<4x256xf32>
    %cst = arith.constant dense<0.000000e+00> : vector<8x256xf32>
    %2 = tpu.matmul %0, %1, %cst {dimension_numbers = #tpu.dot_dimension_numbers<[1], [0], [0], [1], [0, 0, 1, 1], [], []>} : vector<8x4xf32>, vector<4x256xf32>, vector<8x256xf32> -> vector<8x256xf32>
    %c0_3 = arith.constant 0 : index
    %c0_4 = arith.constant 0 : index
    %3 = vector.load %arg3[%c0_3, %c0_4] : memref<8x1xf32, #tpu.memory_space<vmem>>, vector<8x1xf32>
    %4 = vector.broadcast %3 : vector<8x1xf32> to vector<8x256xf32>
    %5 = arith.addf %2, %4 : vector<8x256xf32>
    %cst_5 = arith.constant 0.000000e+00 : f32
    %6 = vector.broadcast %cst_5 : f32 to vector<8x256xf32>
    %7 = arith.maximumf %5, %6 : vector<8x256xf32>
    %c0_6 = arith.constant 0 : index
    %c0_7 = arith.constant 0 : index
    %8 = vector.load %arg6[%c0_6, %c0_7] : memref<9x256xf32, #tpu.memory_space<vmem>>, vector<9x256xf32>
    %c17_i32 = arith.constant 17 : i32
    %9 = tpu.dynamic_rotate %7 by %c17_i32 dim 1 : vector<8x256xf32>, i32 -> vector<8x256xf32>
    %10 = vector.extract_strided_slice %8 {offsets = [0, 0], sizes = [1, 256], strides = [1, 1]} : vector<9x256xf32> to vector<1x256xf32>
    %11 = vector.broadcast %10 : vector<1x256xf32> to vector<8x256xf32>
    %12 = arith.mulf %9, %11 : vector<8x256xf32>
    %c16_i32 = arith.constant 16 : i32
    %13 = tpu.dynamic_rotate %7 by %c16_i32 dim 1 : vector<8x256xf32>, i32 -> vector<8x256xf32>
    %14 = vector.extract_strided_slice %8 {offsets = [1, 0], sizes = [1, 256], strides = [1, 1]} : vector<9x256xf32> to vector<1x256xf32>
    %15 = vector.broadcast %14 : vector<1x256xf32> to vector<8x256xf32>
    %16 = arith.mulf %13, %15 : vector<8x256xf32>
    %c15_i32 = arith.constant 15 : i32
    %17 = tpu.dynamic_rotate %7 by %c15_i32 dim 1 : vector<8x256xf32>, i32 -> vector<8x256xf32>
    %18 = vector.extract_strided_slice %8 {offsets = [2, 0], sizes = [1, 256], strides = [1, 1]} : vector<9x256xf32> to vector<1x256xf32>
    %19 = vector.broadcast %18 : vector<1x256xf32> to vector<8x256xf32>
    %20 = arith.mulf %17, %19 : vector<8x256xf32>
    %c1_i32 = arith.constant 1 : i32
    %21 = tpu.dynamic_rotate %7 by %c1_i32 dim 1 : vector<8x256xf32>, i32 -> vector<8x256xf32>
    %22 = vector.extract_strided_slice %8 {offsets = [3, 0], sizes = [1, 256], strides = [1, 1]} : vector<9x256xf32> to vector<1x256xf32>
    %23 = vector.broadcast %22 : vector<1x256xf32> to vector<8x256xf32>
    %24 = arith.mulf %21, %23 : vector<8x256xf32>
    %c255_i32 = arith.constant 255 : i32
    %25 = tpu.dynamic_rotate %7 by %c255_i32 dim 1 : vector<8x256xf32>, i32 -> vector<8x256xf32>
    %26 = vector.extract_strided_slice %8 {offsets = [5, 0], sizes = [1, 256], strides = [1, 1]} : vector<9x256xf32> to vector<1x256xf32>
    %27 = vector.broadcast %26 : vector<1x256xf32> to vector<8x256xf32>
    %28 = arith.mulf %25, %27 : vector<8x256xf32>
    %c241_i32 = arith.constant 241 : i32
    %29 = tpu.dynamic_rotate %7 by %c241_i32 dim 1 : vector<8x256xf32>, i32 -> vector<8x256xf32>
    %30 = vector.extract_strided_slice %8 {offsets = [6, 0], sizes = [1, 256], strides = [1, 1]} : vector<9x256xf32> to vector<1x256xf32>
    %31 = vector.broadcast %30 : vector<1x256xf32> to vector<8x256xf32>
    %32 = arith.mulf %29, %31 : vector<8x256xf32>
    %c240_i32 = arith.constant 240 : i32
    %33 = tpu.dynamic_rotate %7 by %c240_i32 dim 1 : vector<8x256xf32>, i32 -> vector<8x256xf32>
    %34 = vector.extract_strided_slice %8 {offsets = [7, 0], sizes = [1, 256], strides = [1, 1]} : vector<9x256xf32> to vector<1x256xf32>
    %35 = vector.broadcast %34 : vector<1x256xf32> to vector<8x256xf32>
    %36 = arith.mulf %33, %35 : vector<8x256xf32>
    %c239_i32 = arith.constant 239 : i32
    %37 = tpu.dynamic_rotate %7 by %c239_i32 dim 1 : vector<8x256xf32>, i32 -> vector<8x256xf32>
    %38 = vector.extract_strided_slice %8 {offsets = [8, 0], sizes = [1, 256], strides = [1, 1]} : vector<9x256xf32> to vector<1x256xf32>
    %39 = vector.broadcast %38 : vector<1x256xf32> to vector<8x256xf32>
    %40 = arith.mulf %37, %39 : vector<8x256xf32>
    %41 = tpu.concatenate %12, %16, %20, %24, %7, %28, %32, %36, %40 in 0 : vector<8x256xf32>, vector<8x256xf32>, vector<8x256xf32>, vector<8x256xf32>, vector<8x256xf32>, vector<8x256xf32>, vector<8x256xf32>, vector<8x256xf32>, vector<8x256xf32> -> vector<72x256xf32>
    %c0_8 = arith.constant 0 : index
    %c0_9 = arith.constant 0 : index
    %42 = vector.load %arg4[%c0_8, %c0_9] : memref<32x72xf32, #tpu.memory_space<vmem>>, vector<32x72xf32>
    %cst_10 = arith.constant dense<0.000000e+00> : vector<32x256xf32>
    %43 = tpu.matmul %42, %41, %cst_10 {dimension_numbers = #tpu.dot_dimension_numbers<[1], [0], [0], [1], [0, 0, 1, 1], [], []>} : vector<32x72xf32>, vector<72x256xf32>, vector<32x256xf32> -> vector<32x256xf32>
    %c0_11 = arith.constant 0 : index
    %c0_12 = arith.constant 0 : index
    %44 = vector.load %arg5[%c0_11, %c0_12] : memref<32x1xf32, #tpu.memory_space<vmem>>, vector<32x1xf32>
    %45 = vector.broadcast %44 : vector<32x1xf32> to vector<32x256xf32>
    %46 = arith.addf %43, %45 : vector<32x256xf32>
    %cst_13 = arith.constant 0.000000e+00 : f32
    %47 = vector.broadcast %cst_13 : f32 to vector<32x256xf32>
    %48 = arith.maximumf %46, %47 : vector<32x256xf32>
    %c0_14 = arith.constant 0 : index
    %c0_15 = arith.constant 0 : index
    %49 = vector.load %arg7[%c0_14, %c0_15] : memref<32x256xf32, #tpu.memory_space<vmem>>, vector<32x256xf32>
    tpu.vector_store %arg7[%c0_14, %c0_15], %48 {strides = array<i32>} : memref<32x256xf32, #tpu.memory_space<vmem>>, vector<32x256xf32>,
    return
  }
  func.func @transform_0(%arg0: i32) -> (i32, i32) {
    %c0_i32 = arith.constant 0 : i32
    %c0_i32_0 = arith.constant 0 : i32
    return %c0_i32, %arg0 : i32, i32
  }
  func.func @transform_1(%arg0: i32) -> (i32, i32) {
    %c0_i32 = arith.constant 0 : i32
    %c0_i32_0 = arith.constant 0 : i32
    %c0_i32_1 = arith.constant 0 : i32
    return %c0_i32, %c0_i32_0 : i32, i32
  }
  func.func @transform_2(%arg0: i32) -> (i32, i32) {
    %c0_i32 = arith.constant 0 : i32
    %c0_i32_0 = arith.constant 0 : i32
    %c0_i32_1 = arith.constant 0 : i32
    return %c0_i32, %c0_i32_0 : i32, i32
  }
  func.func @transform_3(%arg0: i32) -> (i32, i32) {
    %c0_i32 = arith.constant 0 : i32
    %c0_i32_0 = arith.constant 0 : i32
    %c0_i32_1 = arith.constant 0 : i32
    return %c0_i32, %c0_i32_0 : i32, i32
  }
  func.func @transform_4(%arg0: i32) -> (i32, i32) {
    %c0_i32 = arith.constant 0 : i32
    %c0_i32_0 = arith.constant 0 : i32
    %c0_i32_1 = arith.constant 0 : i32
    return %c0_i32, %c0_i32_0 : i32, i32
  }
  func.func @transform_5(%arg0: i32) -> (i32, i32) {
    %c0_i32 = arith.constant 0 : i32
    %c0_i32_0 = arith.constant 0 : i32
    %c0_i32_1 = arith.constant 0 : i32
    return %c0_i32, %c0_i32_0 : i32, i32
  }
  func.func @transform_6(%arg0: i32) -> (i32, i32) {
    %c0_i32 = arith.constant 0 : i32
    %c0_i32_0 = arith.constant 0 : i32
    return %c0_i32, %arg0 : i32, i32
  }
}

</mosaic_0001>

<bundles_post_ra>
// kernel: tpu_custom_call.1
= control target key start
LH: loop header
LB: loop body
LE: loop exit
PB: predicated region body
PF: predicated region fallthrough
CT: control target
= control target key end

     0   :  { %11 = vsyncpa [#allocation3], 0  ;;  %s1281_s0 = inlined_call_operand.hbm [shape: f32[4,512], index: 0, kind: input, shape index: {}]   ;;  %s1282_s1 = inlined_call_operand.vmem [shape: f32[8,4], index: 1, kind: input, shape index: {}]   ;;  %s1283_s2 = inlined_call_operand.vmem [shape: f32[8,1], index: 2, kind: input, shape index: {}]   ;;  %s1284_s3 = inlined_call_operand.vmem [shape: f32[32,72], index: 3, kind: input, shape index: {}]   ;;  %s1285_s4 = inlined_call_operand.vmem [shape: f32[32,1], index: 4, kind: input, shape index: {}]   ;;  %s1286_s5 = inlined_call_operand.vmem [shape: f32[9,256], index: 5, kind: input, shape index: {}]   ;;  %s1287_s6 = inlined_call_operand.hbm [shape: f32[32,512], index: 6, kind: output, shape index: {}]  }
   0x1   :  { %13 = vsyncpa [#allocation3 + $0x1], 0 }
   0x2   :  { %14 = vsyncpa [#allocation4], 0 }
   0x3   :  { %16 = vsyncpa [#allocation4 + $0x1], 0  ;;  %s996_s21 = smov 0   ;;  %s998_s22 = smov 0  }
   0x4   :  { %s1000_s23 = smov 0   ;;  %s1002_s24 = smov 0  }
   0x5 LB: > { %s1017_s25 = sadd.s32 4294967295, %s945_s24   ;;  %s737_s26 = sadd.s32 4294967294, %s945_s24   ;;  %s945_s24 = sphi %s1002_s24, %s1302_s24   ;;  %s941_s23 = sphi %s1000_s23, %s1301_s23   ;;  %s937_s22 = sphi %s998_s22, %s1300_s22   ;;  %s933_s21 = sphi %s996_s21, %s1299_s21  }
   0x6   : > { %s1021_s27 = sadd.s32 1, %s945_s24   ;;  %s29_s28 = sadd.s32 1, %s941_s23 }
   0x7   : > { %s26_s29 = ssub.s32 %s945_s24, %s1021_s27  ;;  %p36_p0 = scmp.ne.s32.totalorder %s941_s23, %s937_s22 }
   0x8   : > { %p27_p1 = scmp.eq.s32.totalorder %s26_s29, 0  ;;  %p37_p2 = scmp.eq.s32.totalorder %s945_s24, 0 }
   0x9   : > { %p42_p3 = scmp.ne.s32.totalorder %s937_s22, %s933_s21  ;;  %p43_p4 = scmp.eq.s32.totalorder %s1017_s25, 0 }
   0xa   : > { %s1033_s30 = scalar_select %p27_p1, %s941_s23, %s29_s28  }
   0xb   : > { %p1035_p5 = por %p37_p2, %p36_p0  ;;  %p1039_p6 = por %p43_p4, %p42_p3 }
   0xc   : > { %p171_p7 = scmp.eq.s32.totalorder %s1017_s25, 1  ;;  %p177_p8 = scmp.eq.s32.totalorder %s737_s26, 1 }
   0xd   : > { %p800_p10 = scmp.lt.s32.totalorder %s945_s24, 2  ;;  %s212_s11 = sand.u32 1, %s941_s23  }
   0xe   : > { %p1046_p11 = por %p171_p7, %p36_p0  ;;  %p1050_p12 = por %p177_p8, %p42_p3 }
   0xf   : > { %s760_s12 = sshll.u32 %s945_s24, 7  ;;  %s740_s13 = sshll.u32 %s212_s11, 3 }
  0x10   : > { %s1291_s9 = scalar_select %p1046_p11, 1, 0 }
  0x11   : > { %s1292_s10 = scalar_select %p1050_p12, 1, 0 }
  0x12   : > { %s1059_s16 = scalar_lea.hbm %s1281_s0, %s760_s12  ;;  %s216_s17 = scalar_lea.vmem [#allocation2], %s740_s13 }
  0x13   : > { %s224_s18 = sshll.u32 %s216_s17, 4  ;;  %p1063_p13 = pnand %p800_p10, %p1035_p5  ;;  %s1067_s18 = int_to_ptr.vmem [resolvable:$true] %s224_s18 }
  0x14   : > { %s213_s20 = scalar_lea.sflag [#allocation3], %s212_s11  ;;  %s849_s26 = scalar_lea.hbm %s1059_s16, 128 }
  0x15   : > { %p850_p2 = scmp.ne.s32.totalorder %s1059_s16, %s849_s26  ;;  %p851_p3 = pneg %p1063_p13 }
  0x16   : > { %s854_s7 = scalar_lea.hbm %s1281_s0, 256  ;;  %p855_p5 = scmp.lt.u32.totalorder %s1059_s16, %s1281_s0 }
  0x17   : > { %p852_p4 = pnand %p851_p3, %p850_p2  ;;  %p856_p8 = scmp.lt.u32.totalorder %s854_s7, %s849_s26 }
  0x18   : > { %p858_p9 = scmp.lt.u32.totalorder %s849_s26, %s1059_s16 }
  0x19   : > { %p853_p7 = pneg %p852_p4  ;;  %p857_p10 = por %p856_p8, %p855_p5 }
  0x1b   : > { %p859_p0 = por %p858_p9, %p857_p10 }
  0x1d   : > { %p860_p1 = pnand %p859_p0, %p853_p7 }
  0x1f   : > { %863 = shalt.err (!%p860_p1)
}
  0x20   : > { %s864_s11 = scalar_lea.vmem %s1067_s18, 128  ;;  %s947_s14 = smov [#allocation2]  }
  0x21   : > { %p865_p2 = scmp.ne.s32.totalorder %s1067_s18, %s864_s11  ;;  %s869_s15 = sshll.u32 %s947_s14, 4  ;;  %s870_s15 = int_to_ptr.vmem [resolvable:$false] %s869_s15 }
  0x22   : > { %s871_s17 = scalar_lea.vmem %s870_s15, 256  ;;  %p872_p11 = scmp.lt.s32.totalorder %s1067_s18, %s870_s15 }
  0x23   : > { %p867_p4 = pnand %p865_p2, %p851_p3  ;;  %p873_p5 = scmp.lt.s32.totalorder %s871_s17, %s864_s11 }
  0x25   : > { %p868_p12 = pneg %p867_p4  ;;  %p874_p8 = por %p873_p5, %p872_p11 }
  0x27   : > { %p875_p9 = pnand %p874_p8, %p868_p12 }
  0x29   : > { %878 = shalt.err (!%p875_p9)
}
  0x2a   : > { %795 = dma.hbm_to_vmem [thread:$0]  (!%p1063_p13), %s1059_s16, 128, %s1067_s18, %s213_s20  }
  0x2b   : > { %p1294_p0 = scmp.lt.s32.totalorder %s945_s24, 3  ;;  %p1295_p1 = scmp.ge.s32.totalorder %s945_s24, 1 }
  0x2d   : > { %p230_p3 = pnand %p1295_p1, %p1294_p0 }
  0x2e   : > { %s1101_s26 = sand.u32 (!%p230_p3), 1, %s937_s22  }
  0x2f   : > { %233 = sbr.rel (%p230_p3) target bundleno = 666 (0x29a), region = 44  ;;  %s744_s28 = sshll.u32 (!%p230_p3), %s1101_s26, 3 }
  0x30   : > { %s236_s29 = scalar_lea.sflag (!%p230_p3), [#allocation3], %s1101_s26  ;;  %s239_s7 = scalar_lea.vmem (!%p230_p3), [#allocation2], %s744_s28 }
  0x36   : > { %924 = dma.done.wait (%p1039_p6), %s236_s29, 128  }
  0x37   : > { %926 = vsyncadd (%p1039_p6), %s236_s29, 4294967168  ;;  %v948_v0 = vmov 0.0   ;;  %v949_v1 = vmov 0   ;;  %v271_v2 = vld [vmem:[%s239_s7] sm:$0xff]  ;;  %vm284_vm0 = vcmask 1043456   ;;  %vm280_vm1 = vcmask 31744  }
  0x38   : > { %353 = vmatprep.mubr.f32.mxu0 %v948_v0  ;;  %846 = vset.pattern.permute.xlu0 %v949_v1  ;;  %v272_v3 = vld [vmem:[%s1283_s2] sm:$0xff]  ;;  %v279_v4 = vcombine.high %v271_v2, %v271_v2  ;;  %s950_s8 = smov 16   ;;  %s951_s12 = smov 17   ;;  %v509_v13 = vld [vmem:[%s1285_s4 + $0x8] sm:$0xff]  ;;  %v511_v14 = vld [vmem:[%s1285_s4 + $0x18] sm:$0xff]  ;;  %v370_v17 = vlaneseq  ;;  %vm532_vm10 = vcmask 588800  }
  0x39   : > { %615 = vmatprep.mubr.f32.mxu1 %v948_v0  ;;  %847 = vset.pattern.permute.xlu1 %v949_v1  ;;  %v270_v5 = vld [vmem:[%s1282_s1] sm:$0xff]  ;;  %s952_s13 = smov 15   ;;  %s953_s11 = smov 1   ;;  %v510_v16 = vld [vmem:[%s1285_s4 + $0x10] sm:$0xff]  ;;  %v1165_v26 = vld [vmem:[%s1286_s5 + $0x8] sm:$0xff] }
  0x3a   : > { %275 = vperm.xlu0 %846, %v272_v3   ;;  %746 = vmatprep.subr.msk.mxu0 %vm284_vm0, %v279_v4  ;;  %s954_s14 = smov 127   ;;  %s955_s15 = smov 113   ;;  %v508_v15 = vld [vmem:[%s1285_s4] sm:$0xff]  ;;  %v1152_v20 = vshrl.u32 %v370_v17, 7  ;;  %v1154_v21 = vand.u32 127, %v370_v17 }
  0x3b   : > { %747 = vmatpush1.msk.msra.mxu0 %vm284_vm0, %v271_v2  ;;  %s956_s17 = smov 112   ;;  %s957_s28 = smov 111   ;;  %v1160_v25 = vld [vmem:[%s1286_s5] sm:$0xff] }
  0x3c   : > { %748 = vmatmul.mubr.msk.f32.vlgmr.msra.gmra.mrb[0].mxu0 %vm280_vm1, %v270_v5  ;;  %v394_v23 = vsub.s32 1, %v1152_v20  ;;  %vm389_vm2 = vcmp.lt.s32.totalorder %v1154_v21, 16  ;;  %v377_v27 = vsub.s32 0, %v1152_v20  ;;  %v428_v28 = vsub.s32 3, %v1152_v20  ;;  %s761_s7 = sshll.u32 %s1017_s25, 8  ;;  %s651_s25 = scalar_lea.sflag [#allocation4], %s1101_s26 }
  0x3d   : > { %609 = vmatprep.mubr.f32.mxu0 %v948_v0  ;;  %v411_v29 = vsub.s32 2, %v1152_v20  ;;  %v445_v34 = vsub.s32 5, %v1152_v20  ;;  %vm406_vm3 = vcmp.lt.s32.totalorder %v1154_v21, 15  ;;  %vm372_vm4 = vcmp.lt.s32.totalorder %v1154_v21, 17  ;;  %s1236_s19 = scalar_lea.hbm %s1287_s6, %s761_s7  ;;  %p1296_p11 = scmp.ne.s32.totalorder %s1291_s9, 0 }
  0x3e   : > { %v395_v30 = vrot.slane %v1160_v25, %v394_v23  ;;  %v399_v31 = vrot.slane %v1165_v26, %v394_v23  ;;  %v378_v37 = vrot.slane %v1160_v25, %v377_v27  ;;  %v382_v38 = vrot.slane %v1165_v26, %v377_v27 }
  0x3f   : > { %vm423_vm5 = vcmp.lt.s32.totalorder %v1154_v21, 1  ;;  %v433_v39 = vrot.slane %v1165_v26, %v428_v28  ;;  %v416_v40 = vrot.slane %v1165_v26, %v411_v29  ;;  %v429_v41 = vrot.slane %v1160_v25, %v428_v28 }
  0x40   : > { %vm440_vm6 = vcmp.lt.s32.totalorder %v1154_v21, 127  ;;  %v450_v46 = vrot.slane %v1165_v26, %v445_v34  ;;  %v412_v55 = vrot.slane %v1160_v25, %v411_v29  ;;  %v446_v63 = vrot.slane %v1160_v25, %v445_v34 }
  0x41   : > { %v462_v2 = vsub.s32 6, %v1152_v20  ;;  %vm457_vm7 = vcmp.lt.s32.totalorder %v1154_v21, 113  ;;  %vm474_vm8 = vcmp.lt.s32.totalorder %v1154_v21, 112  ;;  %vm491_vm9 = vcmp.lt.s32.totalorder %v1154_v21, 111 }
  0xb9   : > { %v276_v6 = vpop.permute.xlu0 %275 }
 0x10f   : > { %v355_v7 = vpop.f32.mrb[0].mxu0 }
 0x110   : > { %v356_v8 = vadd.f32 %v355_v7, %v276_v6  ;;  %v357_v9 = vpop.f32.mrb[1].mxu0 }
 0x111   : > { %v358_v11 = vadd.f32 %v357_v9, %v276_v6  ;;  %v479_v6 = vsub.s32 7, %v1152_v20 }
 0x112   : > { %v1118_v10 = vmax.f32 %v356_v8, 0.0 }
 0x113   : > { %v1123_v12 = vmax.f32 %v358_v11, 0.0  ;;  %v480_v17 = vrot.slane %v1160_v25, %v479_v6 }
 0x114   : > { %385 = vrot.lane.b32.xlu1 %v1118_v10, %s950_s8  ;;  %366 = vrot.lane.b32.xlu0 %v1118_v10, %s951_s12 }
 0x118   : > { %402 = vrot.lane.b32.xlu1 %v1118_v10, %s952_s13  ;;  %387 = vrot.lane.b32.xlu0 %v1123_v12, %s950_s8 }
 0x11c   : > { %419 = vrot.lane.b32.xlu1 %v1118_v10, %s953_s11  ;;  %404 = vrot.lane.b32.xlu0 %v1123_v12, %s952_s13 }
 0x120   : > { %368 = vrot.lane.b32.xlu1 %v1123_v12, %s951_s12  ;;  %421 = vrot.lane.b32.xlu0 %v1123_v12, %s953_s11  ;;  %s958_s12 = smov [#allocation5]  }
 0x121   : > { %s883_s13 = sshll.u32 %s958_s12, 4  ;;  %s884_s13 = int_to_ptr.vmem [resolvable:$false] %s883_s13 }
 0x122   : > { %s885_s11 = scalar_lea.vmem %s884_s13, 2048 }
 0x124   : > { %436 = vrot.lane.b32.xlu1 %v1118_v10, %s954_s14  ;;  %438 = vrot.lane.b32.xlu0 %v1123_v12, %s954_s14 }
 0x128   : > { %453 = vrot.lane.b32.xlu1 %v1118_v10, %s955_s15  ;;  %455 = vrot.lane.b32.xlu0 %v1123_v12, %s955_s15 }
 0x12c   : > { %470 = vrot.lane.b32.xlu1 %v1118_v10, %s956_s17  ;;  %472 = vrot.lane.b32.xlu0 %v1123_v12, %s956_s17  ;;  %s745_s17 = sshll.u32 %s1101_s26, 6 }
 0x130   : > { %487 = vrot.lane.b32.xlu1 %v1118_v10, %s957_s28  ;;  %489 = vrot.lane.b32.xlu0 %v1123_v12, %s957_s28  ;;  %s267_s28 = scalar_lea.vmem [#allocation5], %s745_s17 }
 0x131   : > { %s664_s29 = sshll.u32 %s267_s28, 4  ;;  %s1231_s29 = int_to_ptr.vmem [resolvable:$true] %s664_s29 }
 0x132   : > { %s879_s20 = scalar_lea.vmem %s1231_s29, 1024  ;;  %p886_p7 = scmp.lt.s32.totalorder %s1231_s29, %s884_s13 }
 0x133   : > { %p880_p6 = scmp.ne.s32.totalorder %s1231_s29, %s879_s20  ;;  %p887_p10 = scmp.lt.s32.totalorder %s885_s11, %s879_s20 }
 0x134   : > { %519 = vperm.xlu0 %846, %v509_v13   ;;  %514 = vperm.xlu1 %847, %v508_v15   ;;  %v467_v15 = vrot.slane %v1165_v26, %v462_v2 }
 0x135   : > { %p881_p12 = pnand %p880_p6, %p1296_p11  ;;  %p888_p2 = por %p887_p10, %p886_p7 }
 0x137   : > { %p882_p13 = pneg %p881_p12 }
 0x138   : > { %529 = vperm.xlu0 %846, %v511_v14   ;;  %524 = vperm.xlu1 %847, %v510_v16   ;;  %v463_v14 = vrot.slane %v1160_v25, %v462_v2 }
 0x139   : > { %p889_p4 = pnand %p888_p2, %p882_p13 }
 0x186   : > { %v386_v18 = vpop.permute.xlu1 %385  ;;  %v367_v19 = vpop.permute.xlu0 %366 }
 0x18a   : > { %v403_v22 = vpop.permute.xlu1 %402  ;;  %v388_v24 = vpop.permute.xlu0 %387 }
 0x18b   : > { %v390_v35 = vsel %vm389_vm2, %v386_v18, %v388_v24  ;;  %v391_v36 = vsel %vm389_vm2, %v388_v24, %v386_v18  ;;  %v484_v18 = vrot.slane %v1165_v26, %v479_v6  ;;  %v750_v26 = vld [vmem:[%s1286_s5 + $0x18] ss:$0 sm:$0xff] }
 0x18c   : > { %v400_v42 = vmul.f32 %v395_v30, %v391_v36  ;;  %v401_v43 = vmul.f32 %v399_v31, %v390_v35 }
 0x18e   : > { %v420_v32 = vpop.permute.xlu1 %419  ;;  %v405_v33 = vpop.permute.xlu0 %404 }
 0x18f   : > { %v407_v47 = vsel %vm406_vm3, %v403_v22, %v405_v33  ;;  %v408_v56 = vsel %vm406_vm3, %v405_v33, %v403_v22 }
 0x190   : > { %v418_v57 = vmul.f32 %v416_v40, %v407_v47  ;;  %v417_v7 = vmul.f32 %v412_v55, %v408_v56  ;;  %v506_v40 = vld [vmem:[%s1284_s3 + $0x10] sm:$0xff] }
 0x192   : > { %v369_v44 = vpop.permute.xlu1 %368  ;;  %v422_v45 = vpop.permute.xlu0 %421 }
 0x193   : > { %v373_v48 = vsel %vm372_vm4, %v367_v19, %v369_v44  ;;  %v374_v49 = vsel %vm372_vm4, %v369_v44, %v367_v19  ;;  %v424_v50 = vsel %vm423_vm5, %v420_v32, %v422_v45  ;;  %v425_v53 = vsel %vm423_vm5, %v422_v45, %v420_v32 }
 0x194   : > { %v383_v51 = vmul.f32 %v378_v37, %v374_v49  ;;  %v384_v52 = vmul.f32 %v382_v38, %v373_v48  ;;  %v435_v54 = vmul.f32 %v433_v39, %v424_v50  ;;  %v434_v62 = vmul.f32 %v429_v41, %v425_v53  ;;  %v505_v38 = vld [vmem:[%s1284_s3 + $0x8] sm:$0xff]  ;;  %v504_v39 = vld [vmem:[%s1284_s3] sm:$0xff]  ;;  %v507_v41 = vld [vmem:[%s1284_s3 + $0x18] sm:$0xff] }
 0x196   : > { %v764_v58 = vpack.c.bf16 %v400_v42, %v383_v51  ;;  %v437_v59 = vpop.permute.xlu1 %436  ;;  %v439_v60 = vpop.permute.xlu0 %438  ;;  %v762_v61 = vpack.c.bf16 %v401_v43, %v384_v52  ;;  %v766_v5 = vpack.c.bf16 %v435_v54, %v418_v57  ;;  %v768_v11 = vpack.c.bf16 %v434_v62, %v417_v7 }
 0x197   : > { %v442_v1 = vsel %vm440_vm6, %v439_v60, %v437_v59  ;;  %v441_v3 = vsel %vm440_vm6, %v437_v59, %v439_v60 }
 0x198   : > { %v452_v4 = vmul.f32 %v450_v46, %v442_v1  ;;  %763 = vmatprep.subr.bf16.mxu0 %v762_v61  ;;  %778 = vmatprep.subr.bf16.mxu1 %v762_v61  ;;  %v451_v13 = vmul.f32 %v446_v63, %v441_v3 }
 0x199   : > { %765 = vmatpush1.bf16.msra.mxu0 %v764_v58  ;;  %783 = vmatpush1.bf16.msra.mxu1 %v764_v58 }
 0x19a   : > { %v454_v8 = vpop.permute.xlu1 %453  ;;  %767 = vmatprep.subr.bf16.mxu0 %v766_v5  ;;  %779 = vmatprep.subr.bf16.mxu1 %v766_v5  ;;  %v456_v9 = vpop.permute.xlu0 %455  ;;  %v770_v16 = vpack.c.bf16 %v452_v4, %v1123_v12  ;;  %v772_v24 = vpack.c.bf16 %v451_v13, %v1118_v10  ;;  %v749_v10 = vld [vmem:[%s1286_s5 + $0x10] ss:$0 sm:$0xff] }
 0x19b   : > { %v458_v19 = vsel %vm457_vm7, %v454_v8, %v456_v9  ;;  %v459_v20 = vsel %vm457_vm7, %v456_v9, %v454_v8 }
 0x19c   : > { %v468_v12 = vmul.f32 %v463_v14, %v458_v19  ;;  %v469_v29 = vmul.f32 %v467_v15, %v459_v20 }
 0x19d   : > { %769 = vmatpush1.bf16.msra.mxu0 %v768_v11  ;;  %784 = vmatpush1.bf16.msra.mxu1 %v768_v11 }
 0x19e   : > { %v471_v22 = vpop.permute.xlu1 %470  ;;  %771 = vmatprep.subr.bf16.mxu0 %v770_v16  ;;  %780 = vmatprep.subr.bf16.mxu1 %v770_v16  ;;  %v473_v23 = vpop.permute.xlu0 %472 }
 0x19f   : > { %v475_v27 = vsel %vm474_vm8, %v471_v22, %v473_v23  ;;  %v476_v28 = vsel %vm474_vm8, %v473_v23, %v471_v22 }
 0x1a0   : > { %v485_v30 = vmul.f32 %v480_v17, %v475_v27  ;;  %v486_v25 = vmul.f32 %v484_v18, %v476_v28 }
 0x1a1   : > { %773 = vmatpush1.bf16.msra.mxu0 %v772_v24  ;;  %785 = vmatpush1.bf16.msra.mxu1 %v772_v24 }
 0x1a2   : > { %v776_v31 = vpack.c.bf16 %v485_v30, %v468_v12  ;;  %v488_v32 = vpop.permute.xlu1 %487  ;;  %v490_v33 = vpop.permute.xlu0 %489  ;;  %v774_v34 = vpack.c.bf16 %v486_v25, %v469_v29 }
 0x1a3   : > { %v493_v35 = vsel %vm491_vm9, %v490_v33, %v488_v32  ;;  %v492_v21 = vsel %vm491_vm9, %v488_v32, %v490_v33 }
 0x1a4   : > { %v503_v36 = vmul.f32 %v750_v26, %v493_v35  ;;  %775 = vmatprep.subr.bf16.mxu0 %v774_v34  ;;  %781 = vmatprep.subr.bf16.mxu1 %v774_v34  ;;  %v502_v37 = vmul.f32 %v749_v10, %v492_v21 }
 0x1a5   : > { %777 = vmatpush1.bf16.msra.mxu0 %v776_v31  ;;  %786 = vmatpush1.bf16.msra.mxu1 %v776_v31 }
 0x1a6   : > { %561 = vmatprep.subr.mxu0 %v503_v36  ;;  %782 = vmatprep.subr.mxu1 %v503_v36 }
 0x1a9   : > { %562 = vmatpush1.msra.mxu0 %v502_v37  ;;  %787 = vmatpush1.msra.mxu1 %v502_v37 }
 0x1aa   : > { %752 = vmatmul.mubr.msk.f32.vlgmr.msra.gmra.mrb[0].mxu1 %vm532_vm10, %v505_v38  ;;  %751 = vmatmul.mubr.msk.f32.vlgmr.msra.gmra.mrb[2].mxu0 %vm532_vm10, %v504_v39 }
 0x1ab   : > { %621 = vmatprep.mubr.f32.mxu1 %v948_v0 }
 0x1ae   : > { %753 = vmatmul.mubr.msk.f32.gmra.mrb[2].mxu1 %vm532_vm10, %v506_v40 }
 0x1af   : > { %627 = vmatprep.mubr.f32.mxu1 %v948_v0 }
 0x1b2   : > { %754 = vmatmul.mubr.msk.f32.gmra.mrb[4].mxu1 %vm532_vm10, %v507_v41 }
 0x1b3   : > { %v515_v42 = vpop.permute.xlu1 %514  ;;  %v520_v43 = vpop.permute.xlu0 %519 }
 0x1b7   : > { %v525_v51 = vpop.permute.xlu1 %524  ;;  %v530_v61 = vpop.permute.xlu0 %529 }
 0x27d   : > { %v617_v44 = vpop.f32.mrb[0].mxu1  ;;  %v611_v45 = vpop.f32.mrb[2].mxu0 }
 0x27e   : > { %v618_v46 = vadd.f32 %v617_v44, %v520_v43  ;;  %v619_v47 = vpop.f32.mrb[1].mxu1  ;;  %v612_v48 = vadd.f32 %v611_v45, %v515_v42  ;;  %v613_v49 = vpop.f32.mrb[3].mxu0 }
 0x27f   : > { %v620_v50 = vadd.f32 %v619_v47, %v520_v43  ;;  %v614_v52 = vadd.f32 %v613_v49, %v515_v42 }
 0x280   : > { %v636_v53 = vmax.f32 %v618_v46, 0.0  ;;  %v634_v54 = vmax.f32 %v612_v48, 0.0 }
 0x281   : > { %v637_v0 = vmax.f32 %v620_v50, 0.0  ;;  %v623_v55 = vpop.f32.mrb[2].mxu1  ;;  %v635_v56 = vmax.f32 %v614_v52, 0.0 }
 0x282   : > { %644 = vst [vmem:[%s267_s28 + $0x10] sm:$0xff] %v636_v53  ;;  %642 = vst [vmem:[%s267_s28] sm:$0xff] %v634_v54  ;;  %v624_v57 = vadd.f32 %v623_v55, %v525_v51  ;;  %v625_v58 = vpop.f32.mrb[3].mxu1 }
 0x283   : > { %645 = vst [vmem:[%s267_s28 + $0x18] sm:$0xff] %v637_v0  ;;  %643 = vst [vmem:[%s267_s28 + $0x8] sm:$0xff] %v635_v56  ;;  %v626_v59 = vadd.f32 %v625_v58, %v525_v51 }
 0x284   : > { %v638_v60 = vmax.f32 %v624_v57, 0.0 }
 0x285   : > { %v639_v62 = vmax.f32 %v626_v59, 0.0  ;;  %v629_v63 = vpop.f32.mrb[4].mxu1 }
 0x286   : > { %646 = vst [vmem:[%s267_s28 + $0x20] sm:$0xff] %v638_v60  ;;  %v630_v1 = vadd.f32 %v629_v63, %v530_v61  ;;  %v631_v2 = vpop.f32.mrb[5].mxu1 }
 0x287   : > { %647 = vst [vmem:[%s267_s28 + $0x28] sm:$0xff] %v639_v62  ;;  %v632_v3 = vadd.f32 %v631_v2, %v530_v61 }
 0x288   : > { %v640_v4 = vmax.f32 %v630_v1, 0.0 }
 0x289   : > { %v641_v5 = vmax.f32 %v632_v3, 0.0 }
 0x28a   : > { %648 = vst [vmem:[%s267_s28 + $0x30] sm:$0xff] %v640_v4 }
 0x28b   : > { %649 = vst [vmem:[%s267_s28 + $0x38] sm:$0xff] %v641_v5 }
 0x28c   : > { %892 = shalt.err (!%p889_p4)
}
 0x28d   : > { %s893_s14 = scalar_lea.hbm %s1236_s19, 1024  ;;  %s897_s28 = scalar_lea.hbm %s1287_s6, 2048 }
 0x28e   : > { %p894_p5 = scmp.ne.s32.totalorder %s1236_s19, %s893_s14  ;;  %p898_p0 = scmp.lt.u32.totalorder %s1236_s19, %s1287_s6 }
 0x28f   : > { %p899_p1 = scmp.lt.u32.totalorder %s897_s28, %s893_s14  ;;  %p901_p6 = scmp.lt.u32.totalorder %s893_s14, %s1236_s19 }
 0x290   : > { %p895_p8 = pnand %p894_p5, %p1296_p11 }
 0x291   : > { %p900_p3 = por %p899_p1, %p898_p0 }
 0x292   : > { %p896_p9 = pneg %p895_p8 }
 0x293   : > { %p902_p12 = por %p901_p6, %p900_p3 }
 0x295   : > { %p903_p13 = pnand %p902_p12, %p896_p9 }
 0x297   : > { %906 = shalt.err (!%p903_p13)
}
 0x298   : > { %s959_s18 = smov 256   ;;  %s960_s20 = smov 512  }
 0x299   : > { %790 = dma.vmem_to_hbm [thread:$0]  (%p1296_p11), %s1231_s29, 1024, %s1236_s19, %s651_s25, %s959_s18, %s960_s20, %s950_s8  }
 0x29a PF: > { %s679_s12 = sand.u32 1, %s933_s21   ;;  %p1297_p7 = scmp.ne.s32.totalorder %s1292_s10, 0 }
 0x29b   : > { %p1298_p10 = scmp.ge.s32.totalorder %s945_s24, 2  ;;  %s680_s13 = scalar_lea.sflag [#allocation4], %s679_s12 }
 0x29d   : > { %p797_p2 = pnand %p1298_p10, %p1297_p7 }
 0x29f   : > { %928 = dma.done.wait (!%p797_p2), %s680_s13, 1024  }
 0x2a0   : > { %930 = vsyncadd (!%p797_p2), %s680_s13, 4294966272  ;;  %p19_p4 = scmp.ge.s32.totalorder %s1021_s27, 4   ;;  %s1299_s21 = smov %s937_s22 }
 0x2a1   : > { %s1300_s22 = smov %s941_s23  ;;  %s1301_s23 = smov %s1033_s30 }
 0x2a2   : > { %s1302_s24 = smov %s1021_s27  ;;  %21 = sbr.rel (!%p19_p4) target bundleno = 5 (0x5), region = 89 }
 0x2a9   :  { %685 = vsyncpa [#allocation3], 1 }
 0x2aa   :  { %687 = vsyncpa [#allocation3 + $0x1], 1 }
 0x2ab   :  { %688 = vsyncpa [#allocation4], 1 }
 0x2ac   :  { %690 = vsyncpa [#allocation4 + $0x1], 1 }

</bundles_post_ra>
